<compile_context>
chip_gen: v7x
topology: tpu7x:2x2x1
jax: 0.10.0
libtpu: 0.0.40
codegen_flags: <defaults>
</compile_context>

<pallas_src>
import functools

import jax
import jax.numpy as jnp
from jax import lax
from jax.experimental import pallas as pl
from jax.experimental.pallas import tpu as pltpu


def _cosine_face_kernel(cos_ref, cost_ref, loss_ref, denom_ref,
                        *, m, s, num_classes):
    k = pl.program_id(1)
    last_k = pl.num_programs(1) - 1
    tc = cos_ref.shape[1]

    @pl.when(k == 0)
    def _init():
        denom_ref[...] = jnp.zeros_like(denom_ref)

    cos = cos_ref[...].astype(jnp.float32)          # (TN, TC) f32
    arg = s * (cos - 1.0)                           # logits - s  (<= 0 for cos <= 1)

    def _accum(a):
        denom_ref[...] += jnp.sum(jnp.exp(a), axis=-1, keepdims=True)

    rem = num_classes % tc                          # static
    if rem == 0:
        # Every C tile is fully in-bounds: no per-element masking at all.
        _accum(arg)
    else:
        @pl.when(k != last_k)
        def _full():
            _accum(arg)

        @pl.when(k == last_k)
        def _edge():
            # Mask garbage out-of-bounds columns of the last C tile before the
            # exp (exp(-1e30) underflows to exactly 0).
            lane = lax.broadcasted_iota(jnp.int32, arg.shape, 1)
            _accum(jnp.where(lane < rem, arg, -1e30))

    @pl.when(k == last_k)
    def _finalize():
        cos_t = cost_ref[...]                       # (TN, 1) f32 target cosine
        # denom currently includes exp(s*cos_t - s) for the target column;
        # swap it for the margin-corrected exp(s*(cos_t - m) - s).
        denom = (denom_ref[...]
                 - jnp.exp(s * (cos_t - 1.0))
                 + jnp.exp(s * (cos_t - m - 1.0)))
        # loss = logsumexp(logits) - target_logit, logsumexp = s + log(denom)
        loss_ref[...] = s + jnp.log(denom) - s * (cos_t - m)


def _round_up(x, mult):
    return (x + mult - 1) // mult * mult


def cosine_face_loss(cos_theta, target, m=0.35, s=30.0,
                     block_n=256, block_c=4096):
    """cos_theta: [N, C] float (f32 or bf16) with values in [-1, 1];
    target: [N] int.  Returns the scalar mean cross-entropy (f32)."""
    n, c = cos_theta.shape
    tgt = target.astype(jnp.int32)

    # Gather the target-class cosine once (touches N elements, not N*C); it is
    # passed as a resident (TN,1) input so no one-hot work happens per element.
    cos_t = jnp.take_along_axis(cos_theta, tgt[:, None], axis=1)
    cos_t = cos_t.astype(jnp.float32)

    # Lane/sublane-aligned tiles; keep >= 2 N-blocks when possible (megacore).
    tn = min(block_n, _round_up(n, 8))
    if n >= 16:
        tn = min(tn, max(8, _round_up(pl.cdiv(n, 2), 8)))
    tc = min(block_c, _round_up(c, 128))

    grid = (pl.cdiv(n, tn), pl.cdiv(c, tc))
    n_pad = grid[0] * tn
    if n_pad != n:                                  # only the tiny column pads
        cos_t = jnp.pad(cos_t, ((0, n_pad - n), (0, 0)))

    kernel = functools.partial(
        _cosine_face_kernel, m=float(m), s=float(s), num_classes=c)

    itemsize = jnp.dtype(cos_theta.dtype).itemsize
    cost = pl.CostEstimate(
        flops=3 * n * c,
        transcendentals=n * c,
        bytes_accessed=n * c * itemsize + n_pad * 8,
    )
    # Double-buffered streamed input + slack for the tiny resident blocks.
    vmem_limit = min(40 * 1024 * 1024,
                     2 * tn * tc * itemsize + 4 * 1024 * 1024)

    per_row = pl.pallas_call(
        kernel,
        out_shape=jax.ShapeDtypeStruct((n_pad, 1), jnp.float32),
        grid_spec=pltpu.PrefetchScalarGridSpec(
            num_scalar_prefetch=0,
            grid=grid,
            in_specs=[
                pl.BlockSpec((tn, tc), lambda i, k: (i, k)),   # streamed cos tile
                pl.BlockSpec((tn, 1), lambda i, k: (i, 0)),    # resident target cos
            ],
            out_specs=pl.BlockSpec((tn, 1), lambda i, k: (i, 0)),
            scratch_shapes=[
                pltpu.VMEM((tn, 1), jnp.float32),              # online exp-sum
            ],
        ),
        compiler_params=pltpu.CompilerParams(
            dimension_semantics=("parallel", "arbitrary"),
            vmem_limit_bytes=vmem_limit,
        ),
        cost_estimate=cost,
    )(cos_theta, cos_t)

    # Drop any padded/garbage rows, mean over the real batch.
    return jnp.sum(per_row[:n, 0]) / n


def _reference(cos_theta, target, m=0.35, s=30.0):
    cos32 = cos_theta.astype(jnp.float32)
    onehot = jax.nn.one_hot(target, cos32.shape[1], dtype=jnp.float32)
    logits = s * (cos32 - m * onehot)
    logp = jax.nn.log_softmax(logits, axis=-1)
    return -jnp.mean(jnp.take_along_axis(logp, target[:, None], axis=1))


if __name__ == "__main__":
    key = jax.random.PRNGKey(0)

    # Test 1: small, unaligned shapes (exercises edge-column masking).
    k1, k2 = jax.random.split(key)
    n, c = 8, 40
    cos = jnp.tanh(jax.random.normal(k1, (n, c), dtype=jnp.float32))
    tgt = jax.random.randint(k2, (n,), 0, c, dtype=jnp.int32)
    out = jax.block_until_ready(cosine_face_loss(cos, tgt))
    ref = _reference(cos, tgt)
    assert jnp.allclose(out, ref, atol=1e-4, rtol=1e-4), (out, ref)

    # Test 2: multi-tile grid on both axes (online accumulation across C,
    # edge tiles on both N and C).
    k3, k4 = jax.random.split(k2)
    n, c = 24, 300
    cos = jnp.tanh(jax.random.normal(k3, (n, c), dtype=jnp.float32))
    tgt = jax.random.randint(k4, (n,), 0, c, dtype=jnp.int32)
    out = jax.block_until_ready(
        cosine_face_loss(cos, tgt, block_n=8, block_c=128))
    ref = _reference(cos, tgt)
    assert jnp.allclose(out, ref, atol=1e-4, rtol=1e-4), (out, ref)

    # Test 3: bf16 input (kernel upcasts to f32 internally).
    cos_bf16 = cos.astype(jnp.bfloat16)
    out = jax.block_until_ready(
        cosine_face_loss(cos_bf16, tgt, block_n=8, block_c=128))
    ref = _reference(cos_bf16, tgt)
    assert jnp.allclose(out, ref, atol=1e-4, rtol=1e-4), (out, ref)

    print("KERNEL_OK")
</pallas_src>

<mosaic_0001>
module attributes {stable_mosaic.version = 11 : i64} {
  func.func @_cosine_face_kernel(%arg0: i32, %arg1: i32, %arg2: memref<8x128xf32, #tpu.memory_space<vmem>>, %arg3: memref<8x1xf32, #tpu.memory_space<vmem>>, %arg4: memref<8x1xf32, #tpu.memory_space<vmem>>, %arg5: memref<8x1xf32, #tpu.memory_space<vmem>>) attributes {dimension_semantics = [#tpu.dimension_semantics<parallel>, #tpu.dimension_semantics<arbitrary>], iteration_bounds = array<i64: 1, 1>, scalar_prefetch = 0 : i64, scratch_operands = 1 : i64, tpu.core_type = #tpu.core_type<tc>, window_params = [{transform_indices = @transform_0, window_bounds = array<i64: 8, 128>}, {transform_indices = @transform_1, window_bounds = array<i64: 8, 1>}, {transform_indices = @transform_2, window_bounds = array<i64: 8, 1>}]} {
    %c0_i32 = arith.constant 0 : i32
    %0 = arith.cmpi eq, %arg1, %c0_i32 : i32
    %1 = arith.extui %0 : i1 to i32
    %c0_i32_0 = arith.constant 0 : i32
    %2 = arith.cmpi ne, %1, %c0_i32_0 : i32
    scf.if %2 {
      %cst_9 = arith.constant 0.000000e+00 : f32
      %17 = vector.broadcast %cst_9 : f32 to vector<8x1xf32>
      %c0_10 = arith.constant 0 : index
      %c0_11 = arith.constant 0 : index
      %18 = vector.load %arg5[%c0_10, %c0_11] : memref<8x1xf32, #tpu.memory_space<vmem>>, vector<8x1xf32>
      tpu.vector_store %arg5[%c0_10, %c0_11], %17 {strides = array<i32>} : memref<8x1xf32, #tpu.memory_space<vmem>>, vector<8x1xf32>,
    } else {
    }
    %c0 = arith.constant 0 : index
    %c0_1 = arith.constant 0 : index
    %3 = vector.load %arg2[%c0, %c0_1] : memref<8x128xf32, #tpu.memory_space<vmem>>, vector<8x128xf32>
    %cst = arith.constant 1.000000e+00 : f32
    %4 = vector.broadcast %cst : f32 to vector<8x128xf32>
    %5 = arith.subf %3, %4 : vector<8x128xf32>
    %cst_2 = arith.constant 3.000000e+01 : f32
    %6 = vector.broadcast %cst_2 : f32 to vector<8x128xf32>
    %7 = arith.mulf %6, %5 : vector<8x128xf32>
    %c0_i32_3 = arith.constant 0 : i32
    %8 = arith.cmpi ne, %arg1, %c0_i32_3 : i32
    %9 = arith.extui %8 : i1 to i32
    %c0_i32_4 = arith.constant 0 : i32
    %10 = arith.cmpi ne, %9, %c0_i32_4 : i32
    scf.if %10 {
      %c0_9 = arith.constant 0 : index
      %c0_10 = arith.constant 0 : index
      %17 = vector.load %arg5[%c0_9, %c0_10] : memref<8x1xf32, #tpu.memory_space<vmem>>, vector<8x1xf32>
      %18 = math.exp %7 : vector<8x128xf32>
      %cst_11 = arith.constant dense<0.000000e+00> : vector<8xf32>
      %19 = vector.multi_reduction <add>, %18, %cst_11 [1] : vector<8x128xf32> to vector<8xf32>
      %20 = vector.shape_cast %19 : vector<8xf32> to vector<8x1xf32>
      %21 = arith.addf %17, %20 : vector<8x1xf32>
      %c0_12 = arith.constant 0 : index
      %c0_13 = arith.constant 0 : index
      %22 = vector.load %arg5[%c0_12, %c0_13] : memref<8x1xf32, #tpu.memory_space<vmem>>, vector<8x1xf32>
      tpu.vector_store %arg5[%c0_12, %c0_13], %21 {strides = array<i32>} : memref<8x1xf32, #tpu.memory_space<vmem>>, vector<8x1xf32>,
    } else {
    }
    %c0_i32_5 = arith.constant 0 : i32
    %11 = arith.cmpi eq, %arg1, %c0_i32_5 : i32
    %12 = arith.extui %11 : i1 to i32
    %c0_i32_6 = arith.constant 0 : i32
    %13 = arith.cmpi ne, %12, %c0_i32_6 : i32
    scf.if %13 {
      %17 = tpu.iota {dimensions = array<i32: 1>} : vector<8x128xi32>
      %c40_i32 = arith.constant 40 : i32
      %18 = vector.broadcast %c40_i32 : i32 to vector<8x128xi32>
      %19 = arith.cmpi slt, %17, %18 : vector<8x128xi32>
      %cst_9 = arith.constant -1.000000e+30 : f32
      %20 = vector.broadcast %cst_9 : f32 to vector<8x128xf32>
      %21 = arith.select %19, %7, %20 : vector<8x128xi1>, vector<8x128xf32>
      %c0_10 = arith.constant 0 : index
      %c0_11 = arith.constant 0 : index
      %22 = vector.load %arg5[%c0_10, %c0_11] : memref<8x1xf32, #tpu.memory_space<vmem>>, vector<8x1xf32>
      %23 = math.exp %21 : vector<8x128xf32>
      %cst_12 = arith.constant dense<0.000000e+00> : vector<8xf32>
      %24 = vector.multi_reduction <add>, %23, %cst_12 [1] : vector<8x128xf32> to vector<8xf32>
      %25 = vector.shape_cast %24 : vector<8xf32> to vector<8x1xf32>
      %26 = arith.addf %22, %25 : vector<8x1xf32>
      %c0_13 = arith.constant 0 : index
      %c0_14 = arith.constant 0 : index
      %27 = vector.load %arg5[%c0_13, %c0_14] : memref<8x1xf32, #tpu.memory_space<vmem>>, vector<8x1xf32>
      tpu.vector_store %arg5[%c0_13, %c0_14], %26 {strides = array<i32>} : memref<8x1xf32, #tpu.memory_space<vmem>>, vector<8x1xf32>,
    } else {
    }
    %c0_i32_7 = arith.constant 0 : i32
    %14 = arith.cmpi eq, %arg1, %c0_i32_7 : i32
    %15 = arith.extui %14 : i1 to i32
    %c0_i32_8 = arith.constant 0 : i32
    %16 = arith.cmpi ne, %15, %c0_i32_8 : i32
    scf.if %16 {
      %c0_9 = arith.constant 0 : index
      %c0_10 = arith.constant 0 : index
      %17 = vector.load %arg3[%c0_9, %c0_10] : memref<8x1xf32, #tpu.memory_space<vmem>>, vector<8x1xf32>
      %c0_11 = arith.constant 0 : index
      %c0_12 = arith.constant 0 : index
      %18 = vector.load %arg5[%c0_11, %c0_12] : memref<8x1xf32, #tpu.memory_space<vmem>>, vector<8x1xf32>
      %cst_13 = arith.constant 1.000000e+00 : f32
      %19 = vector.broadcast %cst_13 : f32 to vector<8x1xf32>
      %20 = arith.subf %17, %19 : vector<8x1xf32>
      %cst_14 = arith.constant 3.000000e+01 : f32
      %21 = vector.broadcast %cst_14 : f32 to vector<8x1xf32>
      %22 = arith.mulf %21, %20 : vector<8x1xf32>
      %23 = math.exp %22 : vector<8x1xf32>
      %24 = arith.subf %18, %23 : vector<8x1xf32>
      %cst_15 = arith.constant 3.500000e-01 : f32
      %25 = vector.broadcast %cst_15 : f32 to vector<8x1xf32>
      %26 = arith.subf %17, %25 : vector<8x1xf32>
      %cst_16 = arith.constant 1.000000e+00 : f32
      %27 = vector.broadcast %cst_16 : f32 to vector<8x1xf32>
      %28 = arith.subf %26, %27 : vector<8x1xf32>
      %cst_17 = arith.constant 3.000000e+01 : f32
      %29 = vector.broadcast %cst_17 : f32 to vector<8x1xf32>
      %30 = arith.mulf %29, %28 : vector<8x1xf32>
      %31 = math.exp %30 : vector<8x1xf32>
      %32 = arith.addf %24, %31 : vector<8x1xf32>
      %33 = math.log %32 : vector<8x1xf32>
      %cst_18 = arith.constant 3.000000e+01 : f32
      %34 = vector.broadcast %cst_18 : f32 to vector<8x1xf32>
      %35 = arith.addf %34, %33 : vector<8x1xf32>
      %cst_19 = arith.constant 3.500000e-01 : f32
      %36 = vector.broadcast %cst_19 : f32 to vector<8x1xf32>
      %37 = arith.subf %17, %36 : vector<8x1xf32>
      %cst_20 = arith.constant 3.000000e+01 : f32
      %38 = vector.broadcast %cst_20 : f32 to vector<8x1xf32>
      %39 = arith.mulf %38, %37 : vector<8x1xf32>
      %40 = arith.subf %35, %39 : vector<8x1xf32>
      %c0_21 = arith.constant 0 : index
      %c0_22 = arith.constant 0 : index
      %41 = vector.load %arg4[%c0_21, %c0_22] : memref<8x1xf32, #tpu.memory_space<vmem>>, vector<8x1xf32>
      tpu.vector_store %arg4[%c0_21, %c0_22], %40 {strides = array<i32>} : memref<8x1xf32, #tpu.memory_space<vmem>>, vector<8x1xf32>,
    } else {
    }
    return
  }
  func.func @transform_0(%arg0: i32, %arg1: i32) -> (i32, i32) {
    %c0_i32 = arith.constant 0 : i32
    return %arg0, %arg1 : i32, i32
  }
  func.func @transform_1(%arg0: i32, %arg1: i32) -> (i32, i32) {
    %c0_i32 = arith.constant 0 : i32
    %c0_i32_0 = arith.constant 0 : i32
    return %arg0, %c0_i32 : i32, i32
  }
  func.func @transform_2(%arg0: i32, %arg1: i32) -> (i32, i32) {
    %c0_i32 = arith.constant 0 : i32
    %c0_i32_0 = arith.constant 0 : i32
    return %arg0, %c0_i32 : i32, i32
  }
}

</mosaic_0001>

<bundles_post_ra>
// kernel: tpu_custom_call.1
= control target key start
LH: loop header
LB: loop body
LE: loop exit
PB: predicated region body
PF: predicated region fallthrough
CT: control target
= control target key end

     0   :  { %v35_v0 = vlaneseq  ;;  %vm15_vm0 = vcmask 7168   ;;  %v83_v2 = vmov 0.0   ;;  %s111_s0 = inlined_call_operand.vmem [shape: f32[8,40], index: 0, kind: input, shape index: {}]   ;;  %s112_s1 = inlined_call_operand.vmem [shape: f32[8,1], index: 1, kind: input, shape index: {}]   ;;  %s113_s2 = inlined_call_operand.vmem [shape: f32[8,1], index: 2, kind: output, shape index: {}]  }
   0x1   :  { %v17_v1 = vld [vmem:[%s111_s0] sm:$0xff]  ;;  %16 = vst.msk [vmem:[#allocation2] sm:$0xff] %vm15_vm0, %v83_v2 }
   0x2   :  { %v70_v3 = vadd.f32 -1.0, %v17_v1  ;;  %v36_v4 = vand.u32 127, %v35_v0  ;;  %v47_v9 = vld [vmem:[%s112_s1] sm:$0xff] }
   0x3   :  { %v72_v10 = vadd.f32 -0.35, %v47_v9  ;;  %v71_v11 = vadd.f32 -1.0, %v47_v9 }
   0x4   :  { %v19_v5 = vmul.f32 30.0, %v70_v3  ;;  %vm37_vm1 = vcmp.lt.s32.totalorder %v36_v4, 40 }
   0x5   :  { %v73_v12 = vadd.f32 -1.0, %v72_v10  ;;  %v50_v13 = vmul.f32 30.0, %v71_v11  ;;  %v63_v27 = vmul.f32 30.0, %v72_v10 }
   0x6   :  { %v38_v6 = vsel %vm37_vm1, %v19_v5, -1e+30 }
   0x7   :  { %v40_v7 = vmul.f32 1.442695, %v38_v6  ;;  %v56_v14 = vmul.f32 30.0, %v73_v12  ;;  %v51_v15 = vmul.f32 1.442695, %v50_v13 }
   0x8   :  { %v39_v17 = vld [vmem:[#allocation2] sm:$0xff] }
   0x9   :  { %75 = vpow2.f32 %v40_v7  ;;  %v57_v16 = vmul.f32 1.442695, %v56_v14 }
   0xa   :  { %77 = vpow2.f32 %v51_v15 }
   0xb   :  { %79 = vpow2.f32 %v57_v16 }
  0x13   :  { %v76_v8 = vpop.eup %75 }
  0x14   :  { %42 = vadd.xlane.f32.xlu0 %v76_v8  ;;  %v78_v20 = vpop.eup %77 }
  0x15   :  { %v80_v21 = vpop.eup %79 }
  0xa1   :  { %v43_v18 = vpop.xlane.xlu0 %42 }
  0xa2   :  { %v44_v19 = vadd.f32 %v43_v18, %v39_v17 }
  0xa4   :  { %46 = vst.msk [vmem:[#allocation2] sm:$0xff] %vm15_vm0, %v44_v19 }
  0xab   :  { %v48_v22 = vld [vmem:[#allocation2] sm:$0xff] }
  0xac   :  { %v53_v23 = vsub.f32 %v48_v22, %v78_v20 }
  0xae   :  { %v59_v24 = vadd.f32 %v80_v21, %v53_v23 }
  0xb0   :  { %81 = vlog2.f32 %v59_v24 }
  0xba   :  { %v82_v25 = vpop.eup %81 }
  0xbb   :  { %v61_v26 = vmul.f32 0.6931472, %v82_v25 }
  0xbd   :  { %v62_v28 = vadd.f32 30.0, %v61_v26 }
  0xbf   :  { %v64_v29 = vsub.f32 %v62_v28, %v63_v27 }
  0xc1   :  { %65 = vst.msk [vmem:[%s113_s2] sm:$0xff] %vm15_vm0, %v64_v29 }

</bundles_post_ra>
